<compile_context>
chip_gen: v5e
topology: v5e:2x2
jax: 0.10.0
libtpu: 0.0.40
codegen_flags: <defaults>
</compile_context>

<pallas_src>
import jax
import jax.numpy as jnp
from jax.experimental import pallas as pl
from jax.experimental.pallas import tpu as pltpu

INIT_SCALE = 0.01  # args.init_scale default


# --------------------------------------------------------------------------
# Kernel
# --------------------------------------------------------------------------
def _mlp_kernel(x_ref, w_fc_t_ref, w_proj_t_ref, o_ref, acc_ref):
    # x_ref:        (tm, n_embd)   bf16 activation tile (pre-cast in wrapper)
    # w_fc_t_ref:   (n_embd, th)   bf16 c_fc.weight^T column chunk
    # w_proj_t_ref: (th, n_embd)   bf16 c_proj.weight^T row chunk
    # o_ref:        (tm, n_embd)   output tile
    # acc_ref:      (tm, n_embd)   f32 accumulator over hidden chunks
    k = pl.program_id(1)

    @pl.when(k == 0)
    def _():
        acc_ref[...] = jnp.zeros_like(acc_ref)

    h = jnp.dot(x_ref[...], w_fc_t_ref[...], preferred_element_type=jnp.float32)
    h = jnp.maximum(h, 0.0)
    h = h * h                                                 # relu(x)^2 in f32
    acc_ref[...] += jnp.dot(h.astype(jnp.bfloat16), w_proj_t_ref[...],
                            preferred_element_type=jnp.float32)

    @pl.when(k == pl.num_programs(1) - 1)
    def _():
        o_ref[...] = acc_ref[...].astype(o_ref.dtype)


# --------------------------------------------------------------------------
# Tiling heuristics
# --------------------------------------------------------------------------
def _tpu_generation():
    """Coarse TPU generation from device_kind; None if unknown."""
    try:
        kind = jax.devices()[0].device_kind.lower()
    except Exception:
        return None
    if "v7" in kind:
        return "v7"
    if "v6" in kind:
        return "v6"
    if "v5" in kind:
        return "v5"
    return None


def _gen_defaults():
    """(tm_target, th_target, m_quantum, vmem_limit_bytes, want_two_m_tiles)."""
    gen = _tpu_generation()
    if gen == "v6":
        # 128 MiB VMEM; big M tile to escape the weight-re-streaming roofline.
        return 1024, 2048, 256, 100 * 1024 * 1024, False
    if gen == "v5":
        # already compute-bound at tm=512; 128x128 MXU -> 128 quantum.
        return 512, 2048, 128, 64 * 1024 * 1024, False
    # v7x (64 MiB VMEM/TC, 2 TCs) and unknown chips: conservative tiles.
    return 256, 1024, 256, 52 * 1024 * 1024, True


def _pick_tile(total, target, quantum, want_two_tiles=False):
    """Tile <= target, multiple of `quantum` (full extent if total < quantum),
    preferring exact divisors of `total`; otherwise the caller pads."""
    if total <= quantum:
        return total
    if want_two_tiles and total >= 2 * quantum:
        target = min(target, (total // 2 // quantum) * quantum)
    t = min(target, (total // quantum) * quantum)
    t = max(t, quantum)
    d = t
    while d >= quantum:
        if total % d == 0:
            return d
        d -= quantum
    return t  # no divisor -> pad up to a multiple of t


# --------------------------------------------------------------------------
# Wrapper
# --------------------------------------------------------------------------
def prepare_mlp_weights(w_fc, w_proj, dtype=jnp.bfloat16):
    """One-time weight prep: transpose PyTorch (out,in) layout and cast.
    w_fc: (4n, n) -> (n, 4n);  w_proj: (n, 4n) -> (4n, n)."""
    return w_fc.T.astype(dtype), w_proj.T.astype(dtype)


def mlp_forward(x, w_fc_t, w_proj_t, *, tm=None, th=None):
    """x: (B, T, n_embd); w_fc_t: (n_embd, 4n) bf16; w_proj_t: (4n, n_embd) bf16."""
    B, T, n_embd = x.shape
    hidden = w_fc_t.shape[1]
    assert w_fc_t.shape == (n_embd, hidden)
    assert w_proj_t.shape == (hidden, n_embd)

    M = B * T
    out_dtype = x.dtype

    tm_target, th_target, m_quantum, vmem_limit, want_two = _gen_defaults()
    if tm is None:
        tm = _pick_tile(M, tm_target, m_quantum, want_two_tiles=want_two)
    if th is None:
        th = _pick_tile(hidden, th_target, 128)

    # Pad M / hidden to the tile grid (zero padding is exact for this MLP).
    m_tiles = pl.cdiv(M, tm)
    h_tiles = pl.cdiv(hidden, th)
    M_pad = m_tiles * tm
    H_pad = h_tiles * th

    # bf16 cast of activations done once here (not per grid step in-kernel).
    x2d = x.reshape(M, n_embd).astype(jnp.bfloat16)
    if M_pad != M:
        x2d = jnp.pad(x2d, ((0, M_pad - M), (0, 0)))
    if H_pad != hidden:
        w_fc_t = jnp.pad(w_fc_t, ((0, 0), (0, H_pad - hidden)))
        w_proj_t = jnp.pad(w_proj_t, ((0, H_pad - hidden), (0, 0)))

    # Honest memory cost: weights are re-streamed once per M-tile.
    weight_bytes = (w_fc_t.size * w_fc_t.dtype.itemsize
                    + w_proj_t.size * w_proj_t.dtype.itemsize)
    bytes_accessed = (x2d.size * x2d.dtype.itemsize
                      + m_tiles * weight_bytes
                      + M_pad * n_embd * jnp.dtype(out_dtype).itemsize)
    cost = pl.CostEstimate(flops=4 * M_pad * n_embd * H_pad,   # two matmuls
                           transcendentals=0,
                           bytes_accessed=int(bytes_accessed))

    out2d = pl.pallas_call(
        _mlp_kernel,
        out_shape=jax.ShapeDtypeStruct((M_pad, n_embd), out_dtype),
        grid_spec=pltpu.PrefetchScalarGridSpec(
            num_scalar_prefetch=0,
            grid=(m_tiles, h_tiles),
            in_specs=[
                pl.BlockSpec((tm, n_embd), lambda i, k: (i, 0)),
                pl.BlockSpec((n_embd, th), lambda i, k: (0, k)),
                pl.BlockSpec((th, n_embd), lambda i, k: (k, 0)),
            ],
            out_specs=pl.BlockSpec((tm, n_embd), lambda i, k: (i, 0)),
            scratch_shapes=[pltpu.VMEM((tm, n_embd), jnp.float32)],
        ),
        compiler_params=pltpu.CompilerParams(
            dimension_semantics=("parallel", "arbitrary"),
            vmem_limit_bytes=vmem_limit),
        cost_estimate=cost,
    )(x2d, w_fc_t, w_proj_t)

    if M_pad != M:
        out2d = out2d[:M]
    return out2d.reshape(B, T, n_embd)


# --------------------------------------------------------------------------
# Init matching the PyTorch module (nn.Linear default init, c_proj scaled)
# --------------------------------------------------------------------------
def init_params(key, n_embd):
    hidden = 4 * n_embd
    k1, k2 = jax.random.split(key)
    bound_fc = 1.0 / jnp.sqrt(n_embd)
    bound_proj = 1.0 / jnp.sqrt(hidden)
    w_fc = jax.random.uniform(k1, (hidden, n_embd), jnp.float32,
                              minval=-bound_fc, maxval=bound_fc)
    w_proj = jax.random.uniform(k2, (n_embd, hidden), jnp.float32,
                                minval=-bound_proj, maxval=bound_proj)
    w_proj = w_proj * INIT_SCALE
    return w_fc, w_proj


if __name__ == "__main__":
    key = jax.random.PRNGKey(0)
    kx, kp = jax.random.split(key)

    B, T, n_embd = 2, 8, 32
    hidden = 4 * n_embd
    x = jax.random.normal(kx, (B, T, n_embd), jnp.float32)
    w_fc, w_proj = init_params(kp, n_embd)

    # one-time weight prep (outside the forward path)
    w_fc_t, w_proj_t = prepare_mlp_weights(w_fc, w_proj)

    out = mlp_forward(x, w_fc_t, w_proj_t)
    out = jax.block_until_ready(out)
    assert out.shape == (B, T, n_embd)

    # Reference 1: bf16-matched numerics (same precision as the kernel).
    M = B * T
    xb = x.reshape(M, n_embd).astype(jnp.bfloat16)
    h = jnp.dot(xb, w_fc_t, preferred_element_type=jnp.float32)
    h = jnp.maximum(h, 0.0)
    h = h * h
    ref_bf16 = jnp.dot(h.astype(jnp.bfloat16), w_proj_t,
                       preferred_element_type=jnp.float32).reshape(B, T, n_embd)
    assert jnp.allclose(out, ref_bf16.astype(out.dtype), atol=1e-5, rtol=1e-3)

    # Reference 2: full-f32 PyTorch semantics, loose tolerance for bf16 matmuls.
    h32 = jnp.maximum(x @ w_fc.T, 0.0) ** 2
    ref_f32 = h32 @ w_proj.T
    err = jnp.max(jnp.abs(out - ref_f32))
    scale = jnp.max(jnp.abs(ref_f32)) + 1e-8
    assert err <= 2e-2 * scale + 1e-6

    # Also exercise the padding path (ragged M not divisible by any MXU tile).
    B2, T2 = 1, 7
    x2 = jax.random.normal(kx, (B2, T2, n_embd), jnp.float32)
    out2 = jax.block_until_ready(mlp_forward(x2, w_fc_t, w_proj_t))
    ref2 = (jnp.maximum(x2 @ w_fc.T, 0.0) ** 2) @ w_proj.T
    err2 = jnp.max(jnp.abs(out2 - ref2))
    scale2 = jnp.max(jnp.abs(ref2)) + 1e-8
    assert out2.shape == (B2, T2, n_embd)
    assert err2 <= 2e-2 * scale2 + 1e-6

    print("KERNEL_OK")
</pallas_src>

<mosaic_0001>
module attributes {stable_mosaic.version = 11 : i64} {
  func.func @_mlp_kernel(%arg0: i32, %arg1: i32, %arg2: memref<16x32xbf16, #tpu.memory_space<vmem>>, %arg3: memref<32x128xbf16, #tpu.memory_space<vmem>>, %arg4: memref<128x32xbf16, #tpu.memory_space<vmem>>, %arg5: memref<16x32xf32, #tpu.memory_space<vmem>>, %arg6: memref<16x32xf32, #tpu.memory_space<vmem>>) attributes {dimension_semantics = [#tpu.dimension_semantics<parallel>, #tpu.dimension_semantics<arbitrary>], iteration_bounds = array<i64: 1, 1>, scalar_prefetch = 0 : i64, scratch_operands = 1 : i64, tpu.core_type = #tpu.core_type<tc>, window_params = [{transform_indices = @transform_0, window_bounds = array<i64: 16, 32>}, {transform_indices = @transform_1, window_bounds = array<i64: 32, 128>}, {transform_indices = @transform_2, window_bounds = array<i64: 128, 32>}, {transform_indices = @transform_3, window_bounds = array<i64: 16, 32>}]} {
    %c0_i32 = arith.constant 0 : i32
    %0 = arith.cmpi eq, %arg1, %c0_i32 : i32
    %1 = arith.extui %0 : i1 to i32
    %c0_i32_0 = arith.constant 0 : i32
    %2 = arith.cmpi ne, %1, %c0_i32_0 : i32
    scf.if %2 {
      %cst_14 = arith.constant 0.000000e+00 : f32
      %18 = vector.broadcast %cst_14 : f32 to vector<16x32xf32>
      %c0_15 = arith.constant 0 : index
      %c0_16 = arith.constant 0 : index
      %19 = vector.load %arg6[%c0_15, %c0_16] : memref<16x32xf32, #tpu.memory_space<vmem>>, vector<16x32xf32>
      tpu.vector_store %arg6[%c0_15, %c0_16], %18 {strides = array<i32>} : memref<16x32xf32, #tpu.memory_space<vmem>>, vector<16x32xf32>,
    } else {
    }
    %c0 = arith.constant 0 : index
    %c0_1 = arith.constant 0 : index
    %3 = vector.load %arg2[%c0, %c0_1] : memref<16x32xbf16, #tpu.memory_space<vmem>>, vector<16x32xbf16>
    %c0_2 = arith.constant 0 : index
    %c0_3 = arith.constant 0 : index
    %4 = vector.load %arg3[%c0_2, %c0_3] : memref<32x128xbf16, #tpu.memory_space<vmem>>, vector<32x128xbf16>
    %cst = arith.constant dense<0.000000e+00> : vector<16x128xf32>
    %5 = tpu.matmul %3, %4, %cst {dimension_numbers = #tpu.dot_dimension_numbers<[1], [0], [0], [1], [0, 0, 1, 1], [], []>} : vector<16x32xbf16>, vector<32x128xbf16>, vector<16x128xf32> -> vector<16x128xf32>
    %cst_4 = arith.constant 0.000000e+00 : f32
    %6 = vector.broadcast %cst_4 : f32 to vector<16x128xf32>
    %7 = arith.maximumf %5, %6 : vector<16x128xf32>
    %8 = arith.mulf %7, %7 : vector<16x128xf32>
    %c0_5 = arith.constant 0 : index
    %c0_6 = arith.constant 0 : index
    %9 = vector.load %arg6[%c0_5, %c0_6] : memref<16x32xf32, #tpu.memory_space<vmem>>, vector<16x32xf32>
    %10 = arith.truncf %8 : vector<16x128xf32> to vector<16x128xbf16>
    %c0_7 = arith.constant 0 : index
    %c0_8 = arith.constant 0 : index
    %11 = vector.load %arg4[%c0_7, %c0_8] : memref<128x32xbf16, #tpu.memory_space<vmem>>, vector<128x32xbf16>
    %cst_9 = arith.constant dense<0.000000e+00> : vector<16x32xf32>
    %12 = tpu.matmul %10, %11, %cst_9 {dimension_numbers = #tpu.dot_dimension_numbers<[1], [0], [0], [1], [0, 0, 1, 1], [], []>} : vector<16x128xbf16>, vector<128x32xbf16>, vector<16x32xf32> -> vector<16x32xf32>
    %13 = arith.addf %9, %12 : vector<16x32xf32>
    %c0_10 = arith.constant 0 : index
    %c0_11 = arith.constant 0 : index
    %14 = vector.load %arg6[%c0_10, %c0_11] : memref<16x32xf32, #tpu.memory_space<vmem>>, vector<16x32xf32>
    tpu.vector_store %arg6[%c0_10, %c0_11], %13 {strides = array<i32>} : memref<16x32xf32, #tpu.memory_space<vmem>>, vector<16x32xf32>,
    %c0_i32_12 = arith.constant 0 : i32
    %15 = arith.cmpi eq, %arg1, %c0_i32_12 : i32
    %16 = arith.extui %15 : i1 to i32
    %c0_i32_13 = arith.constant 0 : i32
    %17 = arith.cmpi ne, %16, %c0_i32_13 : i32
    scf.if %17 {
      %c0_14 = arith.constant 0 : index
      %c0_15 = arith.constant 0 : index
      %18 = vector.load %arg6[%c0_14, %c0_15] : memref<16x32xf32, #tpu.memory_space<vmem>>, vector<16x32xf32>
      %c0_16 = arith.constant 0 : index
      %c0_17 = arith.constant 0 : index
      %19 = vector.load %arg5[%c0_16, %c0_17] : memref<16x32xf32, #tpu.memory_space<vmem>>, vector<16x32xf32>
      tpu.vector_store %arg5[%c0_16, %c0_17], %18 {strides = array<i32>} : memref<16x32xf32, #tpu.memory_space<vmem>>, vector<16x32xf32>,
    } else {
    }
    return
  }
  func.func @transform_0(%arg0: i32, %arg1: i32) -> (i32, i32) {
    %c0_i32 = arith.constant 0 : i32
    %c0_i32_0 = arith.constant 0 : i32
    return %arg0, %c0_i32 : i32, i32
  }
  func.func @transform_1(%arg0: i32, %arg1: i32) -> (i32, i32) {
    %c0_i32 = arith.constant 0 : i32
    %c0_i32_0 = arith.constant 0 : i32
    return %c0_i32, %arg1 : i32, i32
  }
  func.func @transform_2(%arg0: i32, %arg1: i32) -> (i32, i32) {
    %c0_i32 = arith.constant 0 : i32
    %c0_i32_0 = arith.constant 0 : i32
    return %arg1, %c0_i32 : i32, i32
  }
  func.func @transform_3(%arg0: i32, %arg1: i32) -> (i32, i32) {
    %c0_i32 = arith.constant 0 : i32
    %c0_i32_0 = arith.constant 0 : i32
    return %arg0, %c0_i32 : i32, i32
  }
}

</mosaic_0001>

<bundles_post_ra>
// kernel: tpu_custom_call.1
= control target key start
LH: loop header
LB: loop body
LE: loop exit
PB: predicated region body
PF: predicated region fallthrough
CT: control target
= control target key end

     0   :  { %s331_s0 = inlined_call_operand.vmem [shape: bf16[16,32], index: 0, kind: input, shape index: {}]   ;;  %s332_s1 = inlined_call_operand.vmem [shape: bf16[32,128], index: 1, kind: input, shape index: {}]   ;;  %s333_s2 = inlined_call_operand.vmem [shape: bf16[128,32], index: 2, kind: input, shape index: {}]   ;;  %s334_s3 = inlined_call_operand.hbm [shape: f32[16,32], index: 3, kind: output, shape index: {}]  }
   0x1   :  { %v225_v0 = vld [vmem:[%s332_s1 + $0x8] sm:$0xff]  ;;  %v233_v1 = vld [vmem:[%s333_s2 + $0x38] sm:$0xff]  ;;  %v224_v2 = vld [vmem:[%s332_s1] sm:$0xff] }
   0x2   :  { %56 = vmatpush.bf16.msra.mxu0 %v225_v0 }
   0x3   :  { %8 = vsyncpa [#allocation4], 0  ;;  %135 = vmatpush.bf16.msra.mxu1 %v233_v1  ;;  %v232_v3 = vld [vmem:[%s333_s2 + $0x30] sm:$0xff]  ;;  %v223_v4 = vld [vmem:[%s331_s0] sm:$0xff]  ;;  %vm20_vm0 = vcmask 261120   ;;  %v264_v11 = vmov 0.0  }
   0x4   :  { %v231_v5 = vld [vmem:[%s333_s2 + $0x28] sm:$0xff]  ;;  %v230_v6 = vld [vmem:[%s333_s2 + $0x20] sm:$0xff]  ;;  %v229_v7 = vld [vmem:[%s333_s2 + $0x18] sm:$0xff]  ;;  %21 = vst.msk [vmem:[#allocation2] sm:$0xff] %vm20_vm0, %v264_v11  ;;  %s166_s8 = sshll.u32 %s334_s3, 4  ;;  %s266_s9 = smov 128   ;;  %s167_s8 = int_to_ptr.hbm [resolvable:$true] %s166_s8 }
   0x5   :  { %v228_v8 = vld [vmem:[%s333_s2 + $0x10] sm:$0xff]  ;;  %v227_v9 = vld [vmem:[%s333_s2 + $0x8] sm:$0xff]  ;;  %v226_v10 = vld [vmem:[%s333_s2] sm:$0xff]  ;;  %22 = vst.msk [vmem:[#allocation2 + $0x8] sm:$0xff] %vm20_vm0, %v264_v11  ;;  %s265_s2 = smov [#allocation3]   ;;  %s267_s10 = smov 8  }
   0x6   :  { %57 = vmatpush.bf16.msra.mxu0 %v224_v2  ;;  %s164_s5 = sshll.u32 %s265_s2, 4  ;;  %s165_s5 = int_to_ptr.vmem [resolvable:$true] %s164_s5 }
   0x7   :  { %136 = vmatpush.bf16.msra.mxu1 %v232_v3 }
   0x9   :  { %190 = vmatmul.msk.bf16.vlgmr.msra.gmra.mxu0 %vm20_vm0, %v223_v4 }
   0xb   :  { %137 = vmatpush.bf16.msra.mxu1 %v231_v5  ;;  %v68_v19 = vld [vmem:[#allocation2] sm:$0xff] }
   0xc   :  { %v69_v22 = vld [vmem:[#allocation2 + $0x8] sm:$0xff] }
   0xf   :  { %138 = vmatpush.bf16.msra.mxu1 %v230_v6 }
  0x13   :  { %139 = vmatpush.bf16.msra.mxu1 %v229_v7 }
  0x17   :  { %140 = vmatpush.bf16.msra.mxu1 %v228_v8 }
  0x1b   :  { %141 = vmatpush.bf16.msra.mxu1 %v227_v9 }
  0x1f   :  { %142 = vmatpush.bf16.msra.mxu1 %v226_v10 }
  0x86   :  { %v59_v12 = vpop.f32.mrf.mxu0 }
  0x87   :  { %v64_v13 = vmax.f32 %v59_v12, 0.0 }
  0x89   :  { %v66_v16 = vmul.f32 %v64_v13, %v64_v13 }
  0x8e   :  { %v61_v14 = vpop.f32.mrf.mxu0 }
  0x8f   :  { %v65_v15 = vmax.f32 %v61_v14, 0.0 }
  0x91   :  { %v67_v17 = vmul.f32 %v65_v15, %v65_v15 }
  0x93   :  { %v70_v18 = vpack.c.bf16 %v67_v17, %v66_v16 }
  0x95   :  { %143 = vmatmul.bf16.vlgmr.msra.gmra.mxu1 %v70_v18 }
 0x112   :  { %v144_v20 = vpop.f32.mrf.mxu1 }
 0x113   :  { %v149_v21 = vadd.f32 %v144_v20, %v68_v19 }
 0x115   :  { %151 = vst.msk [vmem:[#allocation2] sm:$0xff] %vm20_vm0, %v149_v21 }
 0x11a   :  { %v146_v23 = vpop.f32.mrf.mxu1 }
 0x11b   :  { %v150_v24 = vadd.f32 %v146_v23, %v69_v22 }
 0x11c   :  { %v156_v25 = vld [vmem:[#allocation2] sm:$0xff] }
 0x11d   :  { %152 = vst.msk [vmem:[#allocation2 + $0x8] sm:$0xff] %vm20_vm0, %v150_v24 }
 0x11e   :  { %158 = vst.msk [vmem:[#allocation3] sm:$0xff] %vm20_vm0, %v156_v25 }
 0x124   :  { %v157_v26 = vld [vmem:[#allocation2 + $0x8] sm:$0xff] }
 0x125   :  { %159 = vst.msk [vmem:[#allocation3 + $0x8] sm:$0xff] %vm20_vm0, %v157_v26 }
 0x126   :  { %172 = dma.vmem_to_hbm [thread:$0]  %s165_s5, 256, %s167_s8, [#allocation4], %s266_s9, %s266_s9, %s267_s10  }
 0x127   :  { %262 = dma.done.wait [#allocation4], 256  }
 0x128   :  { %263 = vsyncadd [#allocation4], 4294967040 }
 0x129   :  { %177 = vsyncpa [#allocation4], 1 }

</bundles_post_ra>
